<compile_context>
chip_gen: v6e
topology: v6e:2x2x1
jax: 0.10.0
libtpu: 0.0.40
codegen_flags: <defaults>
</compile_context>

<pallas_src>
import jax
import jax.numpy as jnp
from jax.experimental import pallas as pl
from jax.experimental.pallas import tpu as pltpu


def _residual_linear_kernel(x_ref, w_ref, out_ref):
    # x_ref:   (TN, H*Fin)          hop-concatenated features for one tile of nodes
    # w_ref:   (H*Fin, OUT_PAD)     block-structured +/-W weight (resident)
    # out_ref: (TN, OUT_PAD)        hstack of residual projections (lane-dense)
    out_ref[...] = jnp.dot(
        x_ref[...], w_ref[...], preferred_element_type=jnp.float32
    ).astype(out_ref.dtype)


def _pick_tile(n, target):
    """Largest tile <= target that divides n exactly and is sublane-friendly."""
    target = max(1, min(target, n))
    for t in range(target, 0, -1):
        if n % t == 0 and (t % 8 == 0 or t == n):
            return t
    return n


def _build_w_big(w, num_hops_plus_one, out_cols_pad):
    """Block-structured weight so that x_wide @ W_big == hstack((x_h - x_0) @ W)."""
    fin, hf = w.shape
    h = num_hops_plus_one
    w_big = jnp.zeros((h * fin, out_cols_pad), dtype=w.dtype)
    for hop in range(1, h):
        col = (hop - 1) * hf
        w_big = w_big.at[hop * fin:(hop + 1) * fin, col:col + hf].set(w)
        w_big = w_big.at[0:fin, col:col + hf].set(-w)
    return w_big


def prompts_forward(x_list, w, b=None, tn=2048):
    """Forward pass of `Prompts` (default config: num_layers=2, dropout=0).

    x_list: list of H = num_hops+1 hop embeddings, each [N, in_feats]
    w:      [in_feats, h_feats]  (PyTorch Linear weight transposed, i.e. weight.T)
    b:      Linear bias — accepted for signature parity; it cancels exactly in the
            residuals (y_h - y_0) and is therefore unused.

    Returns residual_embed: [N, (H-1)*h_feats], identical (to float tolerance) to
    torch.hstack([Linear(x_h) - Linear(x_0) for h in 1..H-1]).
    """
    del b  # bias cancels in the residual
    H = len(x_list)
    N, Fin = x_list[0].shape
    Hf = w.shape[1]
    out_cols = (H - 1) * Hf
    # Keep the output lane-dense: pad the (tiny) weight columns up to a multiple
    # of 128 and slice the result; with the defaults out_cols is exactly 128.
    out_cols_pad = pl.cdiv(out_cols, 128) * 128

    # Hop-concatenated slab: each node's H*Fin features are contiguous in HBM.
    x_wide = jnp.concatenate(x_list, axis=1)            # [N, H*Fin]
    w_big = _build_w_big(w, H, out_cols_pad)             # [H*Fin, out_cols_pad]

    # Node tile: divide N exactly (no jnp.pad copy of the input slab) and prefer
    # >= 2 grid steps so the v7x megacore has work for both TensorCores and the
    # BlockSpec pipeline can overlap DMA with compute on v5e/v6e.
    tile = _pick_tile(N, min(tn, max(N // 2, 1)))
    n_tiles = N // tile

    out = pl.pallas_call(
        _residual_linear_kernel,
        out_shape=jax.ShapeDtypeStruct((N, out_cols_pad), x_wide.dtype),
        grid_spec=pltpu.PrefetchScalarGridSpec(
            num_scalar_prefetch=0,
            grid=(n_tiles,),
            in_specs=[
                # One tile of nodes, all hops packed on the lane axis.
                pl.BlockSpec((tile, H * Fin), lambda i: (i, 0)),
                # Tiny block-structured weight; resident across the whole grid.
                pl.BlockSpec((H * Fin, out_cols_pad), lambda i: (0, 0)),
            ],
            # Final hstack layout emitted directly, full-width 128-lane stores.
            out_specs=pl.BlockSpec((tile, out_cols_pad), lambda i: (i, 0)),
        ),
        compiler_params=pltpu.CompilerParams(
            dimension_semantics=("parallel",)),
    )(x_wide, w_big)

    return out[:, :out_cols] if out_cols_pad != out_cols else out


def reference_forward(x_list, w, b):
    # Un-folded reference: y_h = x_h @ W + b, residuals vs hop 0, hstack.
    ys = [x @ w + b for x in x_list]
    res = [ys[h] - ys[0] for h in range(1, len(ys))]
    return jnp.concatenate(res, axis=1)


if __name__ == "__main__":
    # Small shapes consistent with the module defaults.
    in_feats = 16
    h_feats = 32
    num_hops = 4               # -> x_list has num_hops + 1 = 5 hop embeddings
    H = num_hops + 1
    N = 256                    # nodes (small demo; wrapper tiles the N axis)

    key = jax.random.PRNGKey(0)
    kx, kw, kb = jax.random.split(key, 3)

    x_list = [
        jax.random.normal(jax.random.fold_in(kx, h), (N, in_feats), dtype=jnp.float32)
        for h in range(H)
    ]
    # Linear(in_feats, h_feats) parameters, weight stored as W^T.
    w = jax.random.normal(kw, (in_feats, h_feats), dtype=jnp.float32) * 0.1
    b = jax.random.normal(kb, (1, h_feats), dtype=jnp.float32) * 0.1

    out = prompts_forward(x_list, w, b, tn=2048)
    out = jax.block_until_ready(out)

    ref = reference_forward(x_list, w, b)
    assert out.shape == (N, (H - 1) * h_feats), out.shape
    assert jnp.allclose(out, ref, atol=1e-5, rtol=1e-5)

    print("KERNEL_OK")
</pallas_src>

<mosaic_0001>
module attributes {stable_mosaic.version = 11 : i64} {
  func.func @_residual_linear_kernel(%arg0: i32, %arg1: memref<128x80xf32, #tpu.memory_space<vmem>>, %arg2: memref<80x128xf32, #tpu.memory_space<vmem>>, %arg3: memref<128x128xf32, #tpu.memory_space<vmem>>) attributes {dimension_semantics = [#tpu.dimension_semantics<parallel>], iteration_bounds = array<i64: 2>, scalar_prefetch = 0 : i64, scratch_operands = 0 : i64, tpu.core_type = #tpu.core_type<tc>, window_params = [{transform_indices = @transform_0, window_bounds = array<i64: 128, 80>}, {pipeline_mode = #tpu.pipeline_mode<synchronous>, transform_indices = @transform_1, window_bounds = array<i64: 80, 128>}, {transform_indices = @transform_2, window_bounds = array<i64: 128, 128>}]} {
    %c0 = arith.constant 0 : index
    %c0_0 = arith.constant 0 : index
    %0 = vector.load %arg1[%c0, %c0_0] : memref<128x80xf32, #tpu.memory_space<vmem>>, vector<128x80xf32>
    %c0_1 = arith.constant 0 : index
    %c0_2 = arith.constant 0 : index
    %1 = vector.load %arg2[%c0_1, %c0_2] : memref<80x128xf32, #tpu.memory_space<vmem>>, vector<80x128xf32>
    %cst = arith.constant dense<0.000000e+00> : vector<128x128xf32>
    %2 = tpu.matmul %0, %1, %cst {dimension_numbers = #tpu.dot_dimension_numbers<[1], [0], [0], [1], [0, 0, 1, 1], [], []>} : vector<128x80xf32>, vector<80x128xf32>, vector<128x128xf32> -> vector<128x128xf32>
    %c0_3 = arith.constant 0 : index
    %c0_4 = arith.constant 0 : index
    %3 = vector.load %arg3[%c0_3, %c0_4] : memref<128x128xf32, #tpu.memory_space<vmem>>, vector<128x128xf32>
    tpu.vector_store %arg3[%c0_3, %c0_4], %2 {strides = array<i32>} : memref<128x128xf32, #tpu.memory_space<vmem>>, vector<128x128xf32>,
    return
  }
  func.func @transform_0(%arg0: i32) -> (i32, i32) {
    %c0_i32 = arith.constant 0 : i32
    %c0_i32_0 = arith.constant 0 : i32
    return %arg0, %c0_i32 : i32, i32
  }
  func.func @transform_1(%arg0: i32) -> (i32, i32) {
    %c0_i32 = arith.constant 0 : i32
    %c0_i32_0 = arith.constant 0 : i32
    %c0_i32_1 = arith.constant 0 : i32
    return %c0_i32, %c0_i32_0 : i32, i32
  }
  func.func @transform_2(%arg0: i32) -> (i32, i32) {
    %c0_i32 = arith.constant 0 : i32
    %c0_i32_0 = arith.constant 0 : i32
    return %arg0, %c0_i32 : i32, i32
  }
}

</mosaic_0001>

<bundles_post_ra>
// kernel: tpu_custom_call.1
= control target key start
LH: loop header
LB: loop body
LE: loop exit
PB: predicated region body
PF: predicated region fallthrough
CT: control target
= control target key end

     0   :  { %7 = vsyncpa [#allocation3], 0  ;;  %s885_s0 = inlined_call_operand.vmem [shape: f32[256,80], index: 0, kind: input, shape index: {}]   ;;  %s886_s1 = inlined_call_operand.vmem [shape: f32[80,128], index: 1, kind: input, shape index: {}]   ;;  %s887_s2 = inlined_call_operand.hbm [shape: f32[256,128], index: 2, kind: output, shape index: {}]  }
   0x1   :  { %9 = vsyncpa [#allocation3 + $0x1], 0  ;;  %s697_s9 = smov 0   ;;  %s699_s10 = smov 0  }
   0x2   :  { %s701_s11 = smov 0   ;;  %s703_s12 = smov 0  }
   0x3 LB: > { %s718_s13 = sadd.s32 4294967295, %s677_s12   ;;  %s457_s14 = sadd.s32 4294967294, %s677_s12   ;;  %s677_s12 = sphi %s703_s12, %s893_s12   ;;  %s673_s11 = sphi %s701_s11, %s892_s11   ;;  %s669_s10 = sphi %s699_s10, %s891_s10   ;;  %s665_s9 = sphi %s697_s9, %s890_s9  }
   0x4   : > { %s722_s15 = sadd.s32 1, %s677_s12   ;;  %s69_s16 = sadd.s32 1, %s673_s11 }
   0x5   : > { %s66_s17 = ssub.s32 %s677_s12, %s722_s15  ;;  %p79_p0 = scmp.ne.s32.totalorder %s673_s11, %s669_s10 }
   0x6   : > { %p67_p1 = scmp.eq.s32.totalorder %s66_s17, 0  ;;  %p80_p2 = scmp.eq.s32.totalorder %s718_s13, 1 }
   0x7   : > { %p85_p3 = scmp.ne.s32.totalorder %s669_s10, %s665_s9  ;;  %p86_p4 = scmp.eq.s32.totalorder %s457_s14, 1 }
   0x8   : > { %s733_s18 = scalar_select %p67_p1, %s673_s11, %s69_s16  }
   0x9   : > { %p735_p5 = por %p80_p2, %p79_p0  ;;  %p739_p6 = por %p86_p4, %p85_p3 }
   0xa   : > { %p460_p7 = scmp.ge.s32.totalorder %s677_s12, 1  ;;  %p116_p8 = scmp.lt.s32.totalorder %s677_s12, 3 }
   0xc   : > { %p117_p9 = pnand %p460_p7, %p116_p8 }
   0xd   : > { %s462_s25 = sshll.u32 (!%p117_p9), %s718_s13, 4  ;;  %s135_s27 = sand.u32 (!%p117_p9), 1, %s669_s10  }
   0xe   : > { %120 = sbr.rel (%p117_p9) target bundleno = 262 (0x106), region = 28  ;;  %p139_p10 = scmp.lt.s32.totalorder (!%p117_p9), %s462_s25, 31 }
   0xf   : > { %s461_s28 = sshll.u32 (!%p117_p9), %s135_s27, 7  ;;  %s485_s30 = sshll.u32 (!%p117_p9), %s718_s13, 11 }
  0x10   : > { %s816_s29 = scalar_lea.vmem (!%p117_p9), [#allocation2], %s461_s28  ;;  %s835_s6 = scalar_lea.hbm (!%p117_p9), %s887_s2, %s485_s30 }
  0x11   : > { %s395_s3 = sshll.u32 (!%p117_p9), %s816_s29, 4  ;;  %s845_s13 = scalar_lea.sflag (!%p117_p9), [#allocation3], %s135_s27  ;;  %s837_s3 = int_to_ptr.vmem [resolvable:$true] %s395_s3 }
  0x12   : > { %s617_s7 = scalar_lea.vmem (!%p117_p9), %s837_s3, 2048  ;;  %s679_s8 = smov (!%p117_p9), [#allocation2]  }
  0x13   : > { %v170_v0 = vld [vmem:[%s886_s1 + $0x48] sm:$0xff]  ;;  %v169_v1 = vld [vmem:[%s886_s1 + $0x40] sm:$0xff]  ;;  %v168_v2 = vld [vmem:[%s886_s1 + $0x38] sm:$0xff]  ;;  %s895_s25 = smov (!%p139_p10, %s462_s25), 31  ;;  %vm171_vm0 = vcmask 654336   ;;  %p618_p11 = scmp.ne.s32.totalorder %s837_s3, %s617_s7 }
  0x14   : > { %512 = vmatprep.subr.mxu0 %v170_v0  ;;  %556 = vmatprep.subr.mxu1 %v170_v0  ;;  %v167_v3 = vld [vmem:[%s886_s1 + $0x30] sm:$0xff]  ;;  %v166_v4 = vld [vmem:[%s886_s1 + $0x28] sm:$0xff]  ;;  %v165_v5 = vld [vmem:[%s886_s1 + $0x20] sm:$0xff]  ;;  %s463_s16 = sshll.u32 %s895_s25, 3  ;;  %s621_s14 = sshll.u32 %s679_s8, 4  ;;  %s622_s14 = int_to_ptr.vmem [resolvable:$false] %s621_s14 }
  0x15   : > { %513 = vmatpush3.msra.mxu0 %v170_v0  ;;  %566 = vmatpush3.msra.mxu1 %v170_v0  ;;  %v164_v6 = vld [vmem:[%s886_s1 + $0x18] sm:$0xff]  ;;  %v163_v7 = vld [vmem:[%s886_s1 + $0x10] sm:$0xff]  ;;  %v162_v8 = vld [vmem:[%s886_s1 + $0x8] sm:$0xff]  ;;  %s776_s24 = scalar_lea.vmem %s885_s0, %s463_s16  ;;  %p619_p12 = pnand %p618_p11, %p735_p5 }
  0x16   : > { %514 = vmatprep.subr.mxu0 %v169_v1  ;;  %557 = vmatprep.subr.mxu1 %v169_v1  ;;  %v161_v9 = vld [vmem:[%s886_s1] sm:$0xff]  ;;  %v146_v12 = vld [vmem:[%s776_s24 + $0x8] sm:$0xff]  ;;  %v147_v14 = vld [vmem:[%s776_s24 + $0x10] sm:$0xff]  ;;  %s623_s16 = scalar_lea.vmem %s622_s14, 4096  ;;  %p624_p0 = scmp.lt.s32.totalorder %s837_s3, %s622_s14 }
  0x17   : > { %515 = vmatpush3.msra.mxu0 %v169_v1  ;;  %567 = vmatpush3.msra.mxu1 %v169_v1  ;;  %v145_v10 = vld [vmem:[%s776_s24] sm:$0xff]  ;;  %v154_v13 = vld [vmem:[%s776_s24 + $0x48] sm:$0xff]  ;;  %v155_v15 = vld [vmem:[%s776_s24 + $0x50] sm:$0xff]  ;;  %p620_p13 = pneg %p619_p12  ;;  %p625_p1 = scmp.lt.s32.totalorder %s623_s16, %s617_s7 }
  0x18   : > { %516 = vmatprep.subr.mxu0 %v168_v2  ;;  %558 = vmatprep.subr.mxu1 %v168_v2  ;;  %v153_v11 = vld [vmem:[%s776_s24 + $0x40] sm:$0xff]  ;;  %v148_v16 = vld [vmem:[%s776_s24 + $0x18] sm:$0xff]  ;;  %v150_v20 = vld [vmem:[%s776_s24 + $0x28] sm:$0xff] }
  0x19   : > { %517 = vmatpush3.msra.mxu0 %v168_v2  ;;  %568 = vmatpush3.msra.mxu1 %v168_v2  ;;  %v156_v17 = vld [vmem:[%s776_s24 + $0x58] sm:$0xff]  ;;  %v149_v18 = vld [vmem:[%s776_s24 + $0x20] sm:$0xff]  ;;  %v158_v21 = vld [vmem:[%s776_s24 + $0x68] sm:$0xff]  ;;  %p626_p2 = por %p625_p1, %p624_p0 }
  0x1a   : > { %518 = vmatprep.subr.mxu0 %v167_v3  ;;  %559 = vmatprep.subr.mxu1 %v167_v3  ;;  %v157_v19 = vld [vmem:[%s776_s24 + $0x60] sm:$0xff]  ;;  %v151_v22 = vld [vmem:[%s776_s24 + $0x30] sm:$0xff]  ;;  %v152_v24 = vld [vmem:[%s776_s24 + $0x38] sm:$0xff] }
  0x1b   : > { %519 = vmatpush3.msra.mxu0 %v167_v3  ;;  %569 = vmatpush3.msra.mxu1 %v167_v3  ;;  %v159_v23 = vld [vmem:[%s776_s24 + $0x70] sm:$0xff]  ;;  %v160_v25 = vld [vmem:[%s776_s24 + $0x78] sm:$0xff]  ;;  %p627_p3 = pnand %p626_p2, %p620_p13 }
  0x1c   : > { %520 = vmatprep.subr.mxu0 %v166_v4  ;;  %560 = vmatprep.subr.mxu1 %v166_v4 }
  0x1d   : > { %521 = vmatpush3.msra.mxu0 %v166_v4  ;;  %570 = vmatpush3.msra.mxu1 %v166_v4 }
  0x1e   : > { %522 = vmatprep.subr.mxu0 %v165_v5  ;;  %561 = vmatprep.subr.mxu1 %v165_v5 }
  0x1f   : > { %523 = vmatpush3.msra.mxu0 %v165_v5  ;;  %571 = vmatpush3.msra.mxu1 %v165_v5 }
  0x20   : > { %524 = vmatprep.subr.mxu0 %v164_v6  ;;  %562 = vmatprep.subr.mxu1 %v164_v6 }
  0x21   : > { %525 = vmatpush3.msra.mxu0 %v164_v6  ;;  %572 = vmatpush3.msra.mxu1 %v164_v6 }
  0x22   : > { %526 = vmatprep.subr.mxu0 %v163_v7  ;;  %563 = vmatprep.subr.mxu1 %v163_v7 }
  0x23   : > { %527 = vmatpush3.msra.mxu0 %v163_v7  ;;  %573 = vmatpush3.msra.mxu1 %v163_v7 }
  0x24   : > { %528 = vmatprep.subr.mxu0 %v162_v8  ;;  %564 = vmatprep.subr.mxu1 %v162_v8 }
  0x25   : > { %529 = vmatpush3.msra.mxu0 %v162_v8  ;;  %574 = vmatpush3.msra.mxu1 %v162_v8 }
  0x26   : > { %530 = vmatprep.subr.mxu0 %v161_v9  ;;  %565 = vmatprep.subr.mxu1 %v161_v9 }
  0x27   : > { %531 = vmatpush3.msra.mxu0 %v161_v9  ;;  %575 = vmatpush3.msra.mxu1 %v161_v9 }
  0x28   : > { %532 = vmatprep.mubr.msk.f32.mxu0 %vm171_vm0, %v145_v10  ;;  %544 = vmatprep.mubr.msk.f32.mxu1 %vm171_vm0, %v153_v11 }
  0x29   : > { %533 = vmatmul.mubr.msk.f32.vlgmr.msra.gmra.mxu0 %vm171_vm0, %v146_v12  ;;  %545 = vmatmul.mubr.msk.f32.vlgmr.msra.gmra.mxu1 %vm171_vm0, %v154_v13 }
  0x2a   : > { %535 = vmatprep.mubr.msk.f32.mxu0 %vm171_vm0, %v147_v14  ;;  %547 = vmatprep.mubr.msk.f32.mxu1 %vm171_vm0, %v155_v15 }
  0x2d   : > { %536 = vmatmul.mubr.msk.f32.gmra.mxu0 %vm171_vm0, %v148_v16  ;;  %548 = vmatmul.mubr.msk.f32.gmra.mxu1 %vm171_vm0, %v156_v17 }
  0x2e   : > { %538 = vmatprep.mubr.msk.f32.mxu0 %vm171_vm0, %v149_v18  ;;  %550 = vmatprep.mubr.msk.f32.mxu1 %vm171_vm0, %v157_v19 }
  0x31   : > { %539 = vmatmul.mubr.msk.f32.gmra.mxu0 %vm171_vm0, %v150_v20  ;;  %551 = vmatmul.mubr.msk.f32.gmra.mxu1 %vm171_vm0, %v158_v21 }
  0x32   : > { %541 = vmatprep.mubr.msk.f32.mxu0 %vm171_vm0, %v151_v22  ;;  %553 = vmatprep.mubr.msk.f32.mxu1 %vm171_vm0, %v159_v23 }
  0x35   : > { %542 = vmatmul.mubr.msk.f32.gmra.mxu0 %vm171_vm0, %v152_v24  ;;  %554 = vmatmul.mubr.msk.f32.gmra.mxu1 %vm171_vm0, %v160_v25 }
  0xe9   : > { %v534_v26 = vpop.f32.mrf.mxu0  ;;  %v546_v27 = vpop.f32.mrf.mxu1 }
  0xea   : > { %366 = vst [vmem:[%s816_s29 + $0x8] sm:$0xff] %v534_v26  ;;  %374 = vst [vmem:[%s816_s29 + $0x48] sm:$0xff] %v546_v27 }
  0xeb   : > { %v286_v28 = vpop.f32.mrf.mxu0  ;;  %v326_v29 = vpop.f32.mrf.mxu1 }
  0xec   : > { %365 = vst [vmem:[%s816_s29] sm:$0xff] %v286_v28  ;;  %373 = vst [vmem:[%s816_s29 + $0x40] sm:$0xff] %v326_v29 }
  0xed   : > { %v537_v30 = vpop.f32.mrf.mxu0  ;;  %v549_v31 = vpop.f32.mrf.mxu1 }
  0xee   : > { %368 = vst [vmem:[%s816_s29 + $0x18] sm:$0xff] %v537_v30  ;;  %376 = vst [vmem:[%s816_s29 + $0x58] sm:$0xff] %v549_v31 }
  0xef   : > { %v296_v32 = vpop.f32.mrf.mxu0  ;;  %v336_v33 = vpop.f32.mrf.mxu1 }
  0xf0   : > { %367 = vst [vmem:[%s816_s29 + $0x10] sm:$0xff] %v296_v32  ;;  %375 = vst [vmem:[%s816_s29 + $0x50] sm:$0xff] %v336_v33 }
  0xf1   : > { %v540_v34 = vpop.f32.mrf.mxu0  ;;  %v552_v35 = vpop.f32.mrf.mxu1 }
  0xf2   : > { %370 = vst [vmem:[%s816_s29 + $0x28] sm:$0xff] %v540_v34  ;;  %378 = vst [vmem:[%s816_s29 + $0x68] sm:$0xff] %v552_v35 }
  0xf3   : > { %v306_v36 = vpop.f32.mrf.mxu0  ;;  %v346_v37 = vpop.f32.mrf.mxu1 }
  0xf4   : > { %369 = vst [vmem:[%s816_s29 + $0x20] sm:$0xff] %v306_v36  ;;  %377 = vst [vmem:[%s816_s29 + $0x60] sm:$0xff] %v346_v37 }
  0xf5   : > { %v543_v38 = vpop.f32.mrf.mxu0  ;;  %v555_v39 = vpop.f32.mrf.mxu1 }
  0xf6   : > { %372 = vst [vmem:[%s816_s29 + $0x38] sm:$0xff] %v543_v38  ;;  %380 = vst [vmem:[%s816_s29 + $0x78] sm:$0xff] %v555_v39 }
  0xf7   : > { %v316_v40 = vpop.f32.mrf.mxu0  ;;  %v356_v41 = vpop.f32.mrf.mxu1 }
  0xf8   : > { %371 = vst [vmem:[%s816_s29 + $0x30] sm:$0xff] %v316_v40  ;;  %379 = vst [vmem:[%s816_s29 + $0x70] sm:$0xff] %v356_v41 }
  0xf9   : > { %630 = shalt.err (!%p627_p3)
}
  0xfa   : > { %s631_s17 = scalar_lea.hbm %s835_s6, 2048  ;;  %s635_s23 = scalar_lea.hbm %s887_s2, 4096 }
  0xfb   : > { %p632_p4 = scmp.ne.s32.totalorder %s835_s6, %s631_s17  ;;  %p636_p9 = scmp.lt.s32.totalorder %s835_s6, %s887_s2 }
  0xfc   : > { %p637_p10 = scmp.lt.s32.totalorder %s635_s23, %s631_s17 }
  0xfd   : > { %p633_p7 = pnand %p632_p4, %p735_p5 }
  0xfe   : > { %p638_p11 = por %p637_p10, %p636_p9 }
  0xff   : > { %p634_p8 = pneg %p633_p7 }
 0x101   : > { %p639_p12 = pnand %p638_p11, %p634_p8 }
 0x103   : > { %642 = shalt.err (!%p639_p12)
}
 0x104   : > { %s680_s26 = smov 128   ;;  %s681_s27 = smov 8  }
 0x105   : > { %576 = dma.vmem_to_hbm [thread:$0]  (%p735_p5), %s837_s3, 2048, %s835_s6, %s845_s13, %s680_s26, %s680_s26, %s681_s27  }
 0x106 PF: > { %p582_p13 = scmp.ge.s32.totalorder %s677_s12, 2  ;;  %s410_s28 = sand.u32 1, %s665_s9  }
 0x107   : > { %s411_s29 = scalar_lea.sflag [#allocation3], %s410_s28 }
 0x108   : > { %p579_p0 = pnand %p582_p13, %p739_p6 }
 0x10a   : > { %p580_p1 = pneg %p579_p0 }
 0x10c   : > { %660 = dma.done.wait (%p580_p1), %s411_s29, 2048  }
 0x10d   : > { %662 = vsyncadd (%p580_p1), %s411_s29, 4294965248  ;;  %p12_p2 = scmp.ge.s32.totalorder %s722_s15, 4   ;;  %s890_s9 = smov %s669_s10 }
 0x10e   : > { %s891_s10 = smov %s673_s11  ;;  %s892_s11 = smov %s733_s18 }
 0x10f   : > { %s893_s12 = smov %s722_s15  ;;  %14 = sbr.rel (!%p12_p2) target bundleno = 3 (0x3), region = 63 }
 0x114   :  { %416 = vsyncpa [#allocation3], 1 }
 0x115   :  { %418 = vsyncpa [#allocation3 + $0x1], 1 }

</bundles_post_ra>
